<compile_context>
chip_gen: v5e
topology: v5e:2x2
jax: 0.10.0
libtpu: 0.0.40
codegen_flags: <defaults>
</compile_context>

<pallas_src>
import functools

import jax
import jax.numpy as jnp
from jax.experimental import pallas as pl
from jax.experimental.pallas import tpu as pltpu


# --------------------------- kernels ----------------------------------------


def _qkv_kernel_fullk(x_ref, w_ref, b_ref, o_ref):
    # x_ref: (tm, dim), w_ref: (dim, tn), b_ref: (1, tn) f32, o_ref: (tm, tn)
    acc = jnp.dot(x_ref[...], w_ref[...], preferred_element_type=jnp.float32)
    o_ref[...] = (acc + b_ref[...]).astype(o_ref.dtype)


def _qkv_kernel_ktiled(x_ref, w_ref, b_ref, o_ref, acc_ref):
    # x_ref: (tm, tk), w_ref: (tk, tn), b_ref: (1, tn) f32,
    # o_ref: (tm, tn), acc_ref: (tm, tn) f32 scratch
    k = pl.program_id(2)

    @pl.when(k == 0)
    def _():
        acc_ref[...] = jnp.zeros_like(acc_ref)

    acc_ref[...] += jnp.dot(
        x_ref[...], w_ref[...], preferred_element_type=jnp.float32
    )

    @pl.when(k == pl.num_programs(2) - 1)
    def _():
        o_ref[...] = (acc_ref[...] + b_ref[...]).astype(o_ref.dtype)


# --------------------------- helpers ----------------------------------------


def _round_up(x, m):
    return ((x + m - 1) // m) * m


def _pick_tn(out_dim, max_tn=512):
    """Largest 128-multiple divisor of out_dim (<= max_tn), else full width."""
    for tn in (512, 384, 256, 128):
        if tn <= max_tn and out_dim % tn == 0:
            return tn
    return out_dim


def _pick_tk(dim):
    """Reduction tile when K-tiling kicks in (dim > 1024)."""
    for tk in (512, 256, 128):
        if dim % tk == 0:
            return tk
    return 256  # dim gets zero-padded up to a multiple of this


# --------------------------- wrapper -----------------------------------------


@functools.partial(
    jax.jit,
    static_argnums=(3,),
    static_argnames=("tm", "tn", "tk", "compute_dtype"),
)
def qkv_linear(x, w_t, b, qk_dim, *, tm=256, tn=None, tk=None,
               compute_dtype=None):
    """x: (..., dim); w_t: (dim, 2*qk_dim+dim); b: (2*qk_dim+dim,).

    Returns (q, kv) with q: (..., qk_dim), kv: (..., qk_dim+dim).
    """
    dim = x.shape[-1]
    out_dim = w_t.shape[-1]
    kv_dim = out_dim - qk_dim
    lead = x.shape[:-1]
    M = 1
    for s in lead:
        M *= s

    out_dtype = x.dtype
    x2 = x.reshape(M, dim)
    w2 = w_t
    b2 = b.astype(jnp.float32).reshape(1, out_dim)

    # Optional low-precision inputs (f32 MXU accumulation stays in-kernel).
    if compute_dtype is not None:
        x2 = x2.astype(compute_dtype)
        w2 = w2.astype(compute_dtype)

    # --- M tiling: shrink tm for tiny M (multiple of 8), pad M up to tm. ----
    tm = max(8, min(tm, _round_up(M, 8)))
    M_pad = _round_up(M, tm)
    if M_pad != M:
        x2 = jnp.pad(x2, ((0, M_pad - M), (0, 0)))

    if tn is None:
        tn = _pick_tn(out_dim)

    # --- choose full-K vs K-tiled path --------------------------------------
    use_ktile = (tk is not None) or (dim > 1024)

    vmem_params = pltpu.CompilerParams(
        dimension_semantics=("parallel", "parallel", "arbitrary")
        if use_ktile
        else ("parallel", "parallel"),
        vmem_limit_bytes=64 * 1024 * 1024,
    )
    cost = pl.CostEstimate(
        flops=2 * M_pad * dim * out_dim,
        transcendentals=0,
        bytes_accessed=(
            x2.size * x2.dtype.itemsize
            + w2.size * w2.dtype.itemsize
            + b2.size * b2.dtype.itemsize
            + M_pad * out_dim * jnp.dtype(out_dtype).itemsize
        ),
    )

    if not use_ktile:
        grid = (M_pad // tm, out_dim // tn)
        out2 = pl.pallas_call(
            _qkv_kernel_fullk,
            out_shape=jax.ShapeDtypeStruct((M_pad, out_dim), out_dtype),
            grid_spec=pltpu.PrefetchScalarGridSpec(
                num_scalar_prefetch=0,
                grid=grid,
                in_specs=[
                    pl.BlockSpec((tm, dim), lambda i, j: (i, 0)),
                    pl.BlockSpec((dim, tn), lambda i, j: (0, j)),
                    pl.BlockSpec((1, tn), lambda i, j: (0, j)),
                ],
                out_specs=pl.BlockSpec((tm, tn), lambda i, j: (i, j)),
            ),
            compiler_params=vmem_params,
            cost_estimate=cost,
        )(x2, w2, b2)
    else:
        if tk is None:
            tk = _pick_tk(dim)
        dim_pad = _round_up(dim, tk)
        if dim_pad != dim:
            # Zero-padded K rows contribute nothing to the accumulation.
            x2 = jnp.pad(x2, ((0, 0), (0, dim_pad - dim)))
            w2 = jnp.pad(w2, ((0, dim_pad - dim), (0, 0)))
        grid = (M_pad // tm, out_dim // tn, dim_pad // tk)
        out2 = pl.pallas_call(
            _qkv_kernel_ktiled,
            out_shape=jax.ShapeDtypeStruct((M_pad, out_dim), out_dtype),
            grid_spec=pltpu.PrefetchScalarGridSpec(
                num_scalar_prefetch=0,
                grid=grid,
                in_specs=[
                    pl.BlockSpec((tm, tk), lambda i, j, k: (i, k)),
                    pl.BlockSpec((tk, tn), lambda i, j, k: (k, j)),
                    pl.BlockSpec((1, tn), lambda i, j, k: (0, j)),
                ],
                out_specs=pl.BlockSpec((tm, tn), lambda i, j, k: (i, j)),
                scratch_shapes=[pltpu.VMEM((tm, tn), jnp.float32)],
            ),
            compiler_params=vmem_params,
            cost_estimate=cost,
        )(x2, w2, b2)

    out2 = out2[:M]
    q = out2[:, :qk_dim].reshape(*lead, qk_dim)
    kv = out2[:, qk_dim:].reshape(*lead, kv_dim)
    return q, kv


def init_qkv_params(key, dim, qk_dim):
    """Deterministic init mimicking nn.Linear(dim, 2*qk_dim+dim) shapes.

    PyTorch stores weight as (out, in) and computes x @ W.T + b; we build the
    transposed weight (in, out) directly.
    """
    out_dim = qk_dim + qk_dim + dim
    k_w, k_b = jax.random.split(key)
    bound = 1.0 / (dim ** 0.5)
    w_t = jax.random.uniform(k_w, (dim, out_dim), jnp.float32, -bound, bound)
    b = jax.random.uniform(k_b, (out_dim,), jnp.float32, -bound, bound)
    return w_t, b


if __name__ == "__main__":
    key = jax.random.PRNGKey(0)
    k_x, k_p, k_x2, k_x3, k_p3 = jax.random.split(key, 5)

    # --- 1) Small shapes consistent with the module: x = (B, H, W, dim) -----
    B, H, W, dim, qk_dim = 2, 8, 8, 32, 16
    x = jax.random.normal(k_x, (B, H, W, dim), jnp.float32)
    w_t, b = init_qkv_params(k_p, dim, qk_dim)

    q, kv = qkv_linear(x, w_t, b, qk_dim)
    jax.block_until_ready((q, kv))

    full = x @ w_t + b
    q_ref, kv_ref = full[..., :qk_dim], full[..., qk_dim:]
    assert q.shape == (B, H, W, qk_dim)
    assert kv.shape == (B, H, W, qk_dim + dim)
    assert jnp.allclose(q, q_ref, atol=1e-5, rtol=1e-5)
    assert jnp.allclose(kv, kv_ref, atol=1e-5, rtol=1e-5)

    # --- 2) Non-divisible M (exercise the padding path) ---------------------
    xo = jax.random.normal(k_x2, (1, 5, 7, dim), jnp.float32)
    qo, kvo = qkv_linear(xo, w_t, b, qk_dim)
    jax.block_until_ready((qo, kvo))
    fullo = xo @ w_t + b
    assert jnp.allclose(qo, fullo[..., :qk_dim], atol=1e-5, rtol=1e-5)
    assert jnp.allclose(kvo, fullo[..., qk_dim:], atol=1e-5, rtol=1e-5)

    # --- 3) K-tiled accumulator path (forced small tk) -----------------------
    dim3, qk3 = 256, 64
    x3 = jax.random.normal(k_x3, (2, 8, 8, dim3), jnp.float32)
    w3, b3 = init_qkv_params(k_p3, dim3, qk3)
    q3, kv3 = qkv_linear(x3, w3, b3, qk3, tk=128)
    jax.block_until_ready((q3, kv3))
    full3 = x3 @ w3 + b3
    assert jnp.allclose(q3, full3[..., :qk3], atol=1e-4, rtol=1e-4)
    assert jnp.allclose(kv3, full3[..., qk3:], atol=1e-4, rtol=1e-4)

    print("KERNEL_OK")
</pallas_src>

<mosaic_0001>
module attributes {stable_mosaic.version = 11 : i64} {
  func.func @_qkv_kernel_fullk(%arg0: i32, %arg1: i32, %arg2: memref<128x32xf32, #tpu.memory_space<vmem>>, %arg3: memref<32x64xf32, #tpu.memory_space<vmem>>, %arg4: memref<1x64xf32, #tpu.memory_space<vmem>>, %arg5: memref<128x64xf32, #tpu.memory_space<vmem>>) attributes {dimension_semantics = [#tpu.dimension_semantics<parallel>, #tpu.dimension_semantics<parallel>], iteration_bounds = array<i64: 1, 1>, scalar_prefetch = 0 : i64, scratch_operands = 0 : i64, tpu.core_type = #tpu.core_type<tc>, window_params = [{transform_indices = @transform_0, window_bounds = array<i64: 128, 32>}, {transform_indices = @transform_1, window_bounds = array<i64: 32, 64>}, {transform_indices = @transform_2, window_bounds = array<i64: 1, 64>}, {transform_indices = @transform_3, window_bounds = array<i64: 128, 64>}]} {
    %c0 = arith.constant 0 : index
    %c0_0 = arith.constant 0 : index
    %0 = vector.load %arg2[%c0, %c0_0] : memref<128x32xf32, #tpu.memory_space<vmem>>, vector<128x32xf32>
    %c0_1 = arith.constant 0 : index
    %c0_2 = arith.constant 0 : index
    %1 = vector.load %arg3[%c0_1, %c0_2] : memref<32x64xf32, #tpu.memory_space<vmem>>, vector<32x64xf32>
    %cst = arith.constant dense<0.000000e+00> : vector<128x64xf32>
    %2 = tpu.matmul %0, %1, %cst {dimension_numbers = #tpu.dot_dimension_numbers<[1], [0], [0], [1], [0, 0, 1, 1], [], []>} : vector<128x32xf32>, vector<32x64xf32>, vector<128x64xf32> -> vector<128x64xf32>
    %c0_3 = arith.constant 0 : index
    %c0_4 = arith.constant 0 : index
    %3 = vector.load %arg4[%c0_3, %c0_4] : memref<1x64xf32, #tpu.memory_space<vmem>>, vector<1x64xf32>
    %4 = vector.broadcast %3 : vector<1x64xf32> to vector<128x64xf32>
    %5 = arith.addf %2, %4 : vector<128x64xf32>
    %c0_5 = arith.constant 0 : index
    %c0_6 = arith.constant 0 : index
    %6 = vector.load %arg5[%c0_5, %c0_6] : memref<128x64xf32, #tpu.memory_space<vmem>>, vector<128x64xf32>
    tpu.vector_store %arg5[%c0_5, %c0_6], %5 {strides = array<i32>} : memref<128x64xf32, #tpu.memory_space<vmem>>, vector<128x64xf32>,
    return
  }
  func.func @transform_0(%arg0: i32, %arg1: i32) -> (i32, i32) {
    %c0_i32 = arith.constant 0 : i32
    %c0_i32_0 = arith.constant 0 : i32
    return %arg0, %c0_i32 : i32, i32
  }
  func.func @transform_1(%arg0: i32, %arg1: i32) -> (i32, i32) {
    %c0_i32 = arith.constant 0 : i32
    %c0_i32_0 = arith.constant 0 : i32
    return %c0_i32, %arg1 : i32, i32
  }
  func.func @transform_2(%arg0: i32, %arg1: i32) -> (i32, i32) {
    %c0_i32 = arith.constant 0 : i32
    %c0_i32_0 = arith.constant 0 : i32
    return %c0_i32, %arg1 : i32, i32
  }
  func.func @transform_3(%arg0: i32, %arg1: i32) -> (i32, i32) {
    %c0_i32 = arith.constant 0 : i32
    return %arg0, %arg1 : i32, i32
  }
}

</mosaic_0001>

<bundles_post_ra>
// kernel: qkv_linear.1
= control target key start
LH: loop header
LB: loop body
LE: loop exit
PB: predicated region body
PF: predicated region fallthrough
CT: control target
= control target key end

     0   :  { %8 = vsyncpa [#allocation3], 0  ;;  %s405_s0 = inlined_call_operand.hbm [shape: f32[128,32], index: 0, kind: input, shape index: {}]   ;;  %s406_s1 = inlined_call_operand.hbm [shape: f32[32,64], index: 1, kind: input, shape index: {}]   ;;  %s407_s2 = inlined_call_operand.vmem [shape: f32[1,64], index: 2, kind: input, shape index: {}]   ;;  %s408_s3 = inlined_call_operand.vmem [shape: f32[128,64], index: 3, kind: output, shape index: {}]  }
   0x1   :  { %s14_s14 = sshll.u32 %s405_s0, 4  ;;  %s15_s14 = int_to_ptr.hbm [resolvable:$true] %s14_s14 }
   0x2   :  { %9 = vsyncpa [#allocation5], 0  ;;  %s292_s15 = smov [#allocation2]   ;;  %s27_s19 = sshll.u32 %s406_s1, 4  ;;  %s28_s19 = int_to_ptr.hbm [resolvable:$true] %s27_s19 }
   0x3   :  { %s16_s16 = sshll.u32 %s292_s15, 4  ;;  %s293_s20 = smov 128   ;;  %s17_s16 = int_to_ptr.vmem [resolvable:$true] %s16_s16 }
   0x4   :  { %s294_s21 = smov 8   ;;  %s295_s22 = smov [#allocation4]  }
   0x5   :  { %22 = dma.hbm_to_vmem [thread:$0]  %s15_s14, 2048, %s17_s16, [#allocation3], %s293_s20, %s293_s20, %s294_s21  }
   0x6   :  { %s29_s23 = sshll.u32 %s295_s22, 4  ;;  %s30_s23 = int_to_ptr.vmem [resolvable:$true] %s29_s23 }
   0x7   :  { %35 = dma.hbm_to_vmem [thread:$0]  %s28_s19, 512, %s30_s23, [#allocation5], %s293_s20, %s293_s20, %s294_s21  }
   0x8   :  { %288 = dma.done.wait [#allocation3], 2048  }
   0x9   :  { %289 = vsyncadd [#allocation3], 4294965248 }
   0xa   :  { %290 = dma.done.wait [#allocation5], 512  }
   0xb   :  { %291 = vsyncadd [#allocation5], 4294966784  ;;  %v65_v0 = vld [vmem:[#allocation4 + $0x18] sm:$0xff]  ;;  %v64_v1 = vld [vmem:[#allocation4 + $0x10] sm:$0xff]  ;;  %vm70_vm0 = vcmask 261120   ;;  %vm184_vm1 = vcmask 523264  }
   0xc   :  { %224 = vmatpush.msra.mxu2 %v65_v0  ;;  %225 = vmatpush.msra.mxu3 %v65_v0  ;;  %v63_v2 = vld [vmem:[#allocation4 + $0x8] sm:$0xff]  ;;  %v62_v3 = vld [vmem:[#allocation4] sm:$0xff]  ;;  %v56_v12 = vld [vmem:[#allocation2 + $0x50] sm:$0xff] }
   0xd   :  { %131 = vmatpush.msra.mxu0 %v65_v0  ;;  %223 = vmatpush.msra.mxu1 %v65_v0  ;;  %v54_v4 = vld [vmem:[#allocation2 + $0x40] sm:$0xff]  ;;  %v55_v8 = vld [vmem:[#allocation2 + $0x48] sm:$0xff]  ;;  %v60_v13 = vld [vmem:[#allocation2 + $0x70] sm:$0xff] }
   0xe   :  { %227 = vmatpush.msra.mxu2 %v64_v1  ;;  %228 = vmatpush.msra.mxu3 %v64_v1  ;;  %v58_v5 = vld [vmem:[#allocation2 + $0x60] sm:$0xff]  ;;  %v59_v9 = vld [vmem:[#allocation2 + $0x68] sm:$0xff]  ;;  %v48_v14 = vld [vmem:[#allocation2 + $0x10] sm:$0xff] }
   0xf   :  { %132 = vmatpush.msra.mxu0 %v64_v1  ;;  %226 = vmatpush.msra.mxu1 %v64_v1  ;;  %v46_v6 = vld [vmem:[#allocation2] sm:$0xff]  ;;  %v47_v10 = vld [vmem:[#allocation2 + $0x8] sm:$0xff]  ;;  %v52_v15 = vld [vmem:[#allocation2 + $0x30] sm:$0xff] }
  0x10   :  { %230 = vmatpush.msra.mxu2 %v63_v2  ;;  %231 = vmatpush.msra.mxu3 %v63_v2  ;;  %v50_v7 = vld [vmem:[#allocation2 + $0x20] sm:$0xff]  ;;  %v51_v11 = vld [vmem:[#allocation2 + $0x28] sm:$0xff]  ;;  %v57_v16 = vld [vmem:[#allocation2 + $0x58] sm:$0xff] }
  0x11   :  { %133 = vmatpush.msra.mxu0 %v63_v2  ;;  %229 = vmatpush.msra.mxu1 %v63_v2  ;;  %v61_v17 = vld [vmem:[#allocation2 + $0x78] sm:$0xff]  ;;  %v239_v20 = vld [vmem:[%s407_s2] ss:$0 sm:$0xff] }
  0x12   :  { %233 = vmatpush.msra.mxu2 %v62_v3  ;;  %234 = vmatpush.msra.mxu3 %v62_v3  ;;  %v49_v18 = vld [vmem:[#allocation2 + $0x18] sm:$0xff] }
  0x13   :  { %215 = vmatmul.msk.f32.vlgmr.msra.gmra.mxu2 %vm70_vm0, %v54_v4  ;;  %219 = vmatmul.msk.f32.vlgmr.msra.gmra.mxu3 %vm70_vm0, %v58_v5  ;;  %v53_v19 = vld [vmem:[#allocation2 + $0x38] sm:$0xff] }
  0x14   :  { %134 = vmatpush.msra.mxu0 %v62_v3  ;;  %232 = vmatpush.msra.mxu1 %v62_v3 }
  0x15   :  { %207 = vmatmul.msk.f32.vlgmr.msra.gmra.mxu0 %vm70_vm0, %v46_v6  ;;  %211 = vmatmul.msk.f32.vlgmr.msra.gmra.mxu1 %vm70_vm0, %v50_v7 }
  0x1b   :  { %216 = vmatmul.msk.f32.gmra.mxu2 %vm70_vm0, %v55_v8  ;;  %220 = vmatmul.msk.f32.gmra.mxu3 %vm70_vm0, %v59_v9 }
  0x1d   :  { %208 = vmatmul.msk.f32.gmra.mxu0 %vm70_vm0, %v47_v10  ;;  %212 = vmatmul.msk.f32.gmra.mxu1 %vm70_vm0, %v51_v11 }
  0x23   :  { %217 = vmatmul.msk.f32.gmra.mxu2 %vm70_vm0, %v56_v12  ;;  %221 = vmatmul.msk.f32.gmra.mxu3 %vm70_vm0, %v60_v13 }
  0x25   :  { %209 = vmatmul.msk.f32.gmra.mxu0 %vm70_vm0, %v48_v14  ;;  %213 = vmatmul.msk.f32.gmra.mxu1 %vm70_vm0, %v52_v15 }
  0x2b   :  { %218 = vmatmul.msk.f32.gmra.mxu2 %vm70_vm0, %v57_v16  ;;  %222 = vmatmul.msk.f32.gmra.mxu3 %vm70_vm0, %v61_v17 }
  0x2d   :  { %210 = vmatmul.msk.f32.gmra.mxu0 %vm70_vm0, %v49_v18  ;;  %214 = vmatmul.msk.f32.gmra.mxu1 %vm70_vm0, %v53_v19 }
  0x92   :  { %v136_v21 = vpop.f32.mrf.mxu0  ;;  %v148_v22 = vpop.f32.mrf.mxu1 }
  0x93   :  { %v137_v23 = vadd.f32 %v239_v20, %v136_v21  ;;  %v149_v24 = vadd.f32 %v239_v20, %v148_v22 }
  0x95   :  { %185 = vst.msk [vmem:[%s408_s3] sm:$0xff] %vm184_vm1, %v137_v23 }
  0x96   :  { %189 = vst.msk [vmem:[%s408_s3 + $0x20] sm:$0xff] %vm184_vm1, %v149_v24  ;;  %v160_v25 = vpop.f32.mrf.mxu2  ;;  %v172_v26 = vpop.f32.mrf.mxu3 }
  0x97   :  { %v161_v27 = vadd.f32 %v239_v20, %v160_v25  ;;  %v173_v28 = vadd.f32 %v239_v20, %v172_v26 }
  0x99   :  { %193 = vst.msk [vmem:[%s408_s3 + $0x40] sm:$0xff] %vm184_vm1, %v161_v27 }
  0x9a   :  { %197 = vst.msk [vmem:[%s408_s3 + $0x60] sm:$0xff] %vm184_vm1, %v173_v28  ;;  %v139_v29 = vpop.f32.mrf.mxu0  ;;  %v151_v30 = vpop.f32.mrf.mxu1 }
  0x9b   :  { %v140_v31 = vadd.f32 %v239_v20, %v139_v29  ;;  %v152_v32 = vadd.f32 %v239_v20, %v151_v30 }
  0x9d   :  { %186 = vst.msk [vmem:[%s408_s3 + $0x8] sm:$0xff] %vm184_vm1, %v140_v31 }
  0x9e   :  { %190 = vst.msk [vmem:[%s408_s3 + $0x28] sm:$0xff] %vm184_vm1, %v152_v32  ;;  %v163_v33 = vpop.f32.mrf.mxu2  ;;  %v175_v34 = vpop.f32.mrf.mxu3 }
  0x9f   :  { %v164_v35 = vadd.f32 %v239_v20, %v163_v33  ;;  %v176_v36 = vadd.f32 %v239_v20, %v175_v34 }
  0xa1   :  { %194 = vst.msk [vmem:[%s408_s3 + $0x48] sm:$0xff] %vm184_vm1, %v164_v35 }
  0xa2   :  { %198 = vst.msk [vmem:[%s408_s3 + $0x68] sm:$0xff] %vm184_vm1, %v176_v36  ;;  %v142_v37 = vpop.f32.mrf.mxu0  ;;  %v154_v38 = vpop.f32.mrf.mxu1 }
  0xa3   :  { %v143_v39 = vadd.f32 %v239_v20, %v142_v37  ;;  %v155_v40 = vadd.f32 %v239_v20, %v154_v38 }
  0xa5   :  { %187 = vst.msk [vmem:[%s408_s3 + $0x10] sm:$0xff] %vm184_vm1, %v143_v39 }
  0xa6   :  { %191 = vst.msk [vmem:[%s408_s3 + $0x30] sm:$0xff] %vm184_vm1, %v155_v40  ;;  %v166_v41 = vpop.f32.mrf.mxu2  ;;  %v178_v42 = vpop.f32.mrf.mxu3 }
  0xa7   :  { %v167_v43 = vadd.f32 %v239_v20, %v166_v41  ;;  %v179_v44 = vadd.f32 %v239_v20, %v178_v42 }
  0xa9   :  { %195 = vst.msk [vmem:[%s408_s3 + $0x50] sm:$0xff] %vm184_vm1, %v167_v43 }
  0xaa   :  { %199 = vst.msk [vmem:[%s408_s3 + $0x70] sm:$0xff] %vm184_vm1, %v179_v44  ;;  %v145_v45 = vpop.f32.mrf.mxu0  ;;  %v157_v46 = vpop.f32.mrf.mxu1 }
  0xab   :  { %v146_v47 = vadd.f32 %v239_v20, %v145_v45  ;;  %v158_v48 = vadd.f32 %v239_v20, %v157_v46 }
  0xad   :  { %188 = vst.msk [vmem:[%s408_s3 + $0x18] sm:$0xff] %vm184_vm1, %v146_v47 }
  0xae   :  { %192 = vst.msk [vmem:[%s408_s3 + $0x38] sm:$0xff] %vm184_vm1, %v158_v48  ;;  %v169_v49 = vpop.f32.mrf.mxu2  ;;  %v181_v50 = vpop.f32.mrf.mxu3 }
  0xaf   :  { %v170_v51 = vadd.f32 %v239_v20, %v169_v49  ;;  %v182_v52 = vadd.f32 %v239_v20, %v181_v50 }
  0xb1   :  { %196 = vst.msk [vmem:[%s408_s3 + $0x58] sm:$0xff] %vm184_vm1, %v170_v51 }
  0xb2   :  { %200 = vst.msk [vmem:[%s408_s3 + $0x78] sm:$0xff] %vm184_vm1, %v182_v52 }
  0xb3   :  { %205 = vsyncpa [#allocation3], 1 }
  0xb4   :  { %206 = vsyncpa [#allocation5], 1 }

</bundles_post_ra>
